<compile_context>
chip_gen: v6e
topology: v6e:2x2x1
jax: 0.10.0
libtpu: 0.0.40
codegen_flags: <defaults>
</compile_context>

<pallas_src>
import functools

import jax
import jax.numpy as jnp
from jax.experimental import pallas as pl
from jax.experimental.pallas import tpu as pltpu

_LANE = 128


def _round_up(x: int, m: int) -> int:
    return ((x + m - 1) // m) * m


def _sublane_multiple(itemsize: int) -> int:
    # 32-bit -> 8 sublanes, 16-bit -> 16 (packed pairs), 8-bit -> 32.
    return max(8, 32 // max(1, itemsize))


def _vmem_capacity_bytes() -> int:
    try:
        return int(pltpu.get_tpu_info().vmem_capacity_bytes)
    except Exception:
        return 64 << 20  # conservative fallback (v7x per-TensorCore physical VMEM)


def _tile_config(itemsize: int):
    """Per-generation (tm_max, tn_max, tk_max, vmem_limit_bytes)."""
    cap = _vmem_capacity_bytes()
    if cap >= (100 << 20):
        # v5e / v6e: 128 MiB physical VMEM -> near-weight-stationary tiles.
        tm, tn, tk = 512, 1024, 1024
        vmem_limit = 100 << 20
    else:
        # v7x: 64 MiB per TensorCore -> keep double-buffered footprint < ~48 MiB.
        tm, tn, tk = 512, 512, 1024
        vmem_limit = 48 << 20
    if itemsize <= 2:
        # bf16 feed: same bytes per tile, twice the K depth.
        tk *= 2
    return tm, tn, tk, vmem_limit


def _apply_activation(acc, activation):
    if activation == "sigmoid":
        return jax.nn.sigmoid(acc)
    return jnp.maximum(acc, 0.0)  # relu


# ---------------------------------------------------------------------------
# Kernels
# ---------------------------------------------------------------------------

def _dense_small_kernel(x_ref, w_ref, b_ref, o_ref, *, activation):
    # x_ref: (tm, Kp), w_ref: (Kp, Np) resident, b_ref: (1, Np), o_ref: (tm, Np)
    acc = jnp.dot(x_ref[...], w_ref[...], preferred_element_type=jnp.float32)
    acc = acc + b_ref[...]
    o_ref[...] = _apply_activation(acc, activation).astype(o_ref.dtype)


def _dense_tiled_kernel(x_ref, w_ref, b_ref, o_ref, acc_ref, *, activation):
    # x_ref: (tm, tk), w_ref: (tk, tn), b_ref: (1, tn), o_ref: (tm, tn)
    # acc_ref: (tm, tn) f32 scratch, resident across the K ("arbitrary") axis.
    k = pl.program_id(2)
    contrib = jnp.dot(x_ref[...], w_ref[...], preferred_element_type=jnp.float32)

    @pl.when(k == 0)
    def _():
        acc_ref[...] = contrib          # no zero-init + RMW on the first step

    @pl.when(k > 0)
    def _():
        acc_ref[...] += contrib

    @pl.when(k == pl.num_programs(2) - 1)
    def _():
        acc = acc_ref[...] + b_ref[...]  # bias added exactly once
        o_ref[...] = _apply_activation(acc, activation).astype(o_ref.dtype)


# ---------------------------------------------------------------------------
# One-time parameter prep (transpose + pad the static weight/bias)
# ---------------------------------------------------------------------------

def prepare_dense_params(weight, bias, compute_dtype=None):
    """weight: (out_size, input_size) PyTorch layout; bias: (out_size,).

    Returns (wt, bias2d): wt is (Kp, Np) = padded weight.T in the compute dtype,
    bias2d is (1, Np) f32.  Do this once per layer, not per forward call.
    """
    N, K = weight.shape
    dtype = jnp.dtype(compute_dtype) if compute_dtype is not None else jnp.dtype(weight.dtype)
    _, tn_max, tk_max, _ = _tile_config(dtype.itemsize)

    tn = min(tn_max, _round_up(N, _LANE))
    tk = min(tk_max, _round_up(K, _LANE))
    Np = _round_up(N, tn)
    Kp = _round_up(K, tk)

    wt = jnp.asarray(weight, dtype=dtype).T            # (K, N): contract K on MXU directly
    if (Kp, Np) != (K, N):
        wt = jnp.pad(wt, ((0, Kp - K), (0, Np - N)))   # zero K-pad is benign for the dot

    b = jnp.asarray(bias, dtype=jnp.float32)           # bias stays f32 (added to f32 acc)
    if Np != N:
        b = jnp.pad(b, (0, Np - N))
    return wt, b.reshape(1, Np)


# ---------------------------------------------------------------------------
# Forward
# ---------------------------------------------------------------------------

@functools.partial(jax.jit, static_argnames=("out_size", "activation"))
def dense_forward(x, wt, bias2d, *, out_size, activation="relu"):
    """x: (..., input_size); wt: (Kp, Np) from prepare_dense_params; bias2d: (1, Np)."""
    if activation not in ("relu", "sigmoid"):
        raise ValueError(f"Unsupported activation: {activation!r} (expected 'relu' or 'sigmoid')")

    Kp, Np = wt.shape
    in_size = x.shape[-1]
    lead = x.shape[:-1]
    out_dtype = x.dtype

    x2d = x.reshape(-1, in_size)
    if x2d.dtype != wt.dtype:
        x2d = x2d.astype(wt.dtype)                     # bf16 MXU feed if params were prepped bf16
    M = x2d.shape[0]

    itemsize = jnp.dtype(wt.dtype).itemsize
    tm_max, tn_max, tk_max, vmem_limit = _tile_config(itemsize)
    sub_m = _sublane_multiple(itemsize)

    # tn/tk reconstruct exactly the values used in prepare_dense_params (Np/Kp are multiples).
    tn = min(tn_max, Np)
    tk = min(tk_max, Kp)
    tm = min(tm_max, _round_up(M, sub_m))
    Mp = _round_up(M, tm)

    # Pad x only when needed (static check under jit).
    pad_m, pad_k = Mp - M, Kp - in_size
    if pad_m or pad_k:
        x2d = jnp.pad(x2d, ((0, pad_m), (0, pad_k)))

    weight_bytes = Kp * Np * itemsize
    out_itemsize = jnp.dtype(out_dtype).itemsize
    small_weight = (weight_bytes <= (4 << 20)) and (Np <= 2048) and (Kp <= 2048)

    if small_weight:
        # -------- Fast path: weight + bias fully resident, 1-D grid over rows. --------
        kernel = functools.partial(_dense_small_kernel, activation=activation)
        out_p = pl.pallas_call(
            kernel,
            out_shape=jax.ShapeDtypeStruct((Mp, Np), out_dtype),
            grid_spec=pltpu.PrefetchScalarGridSpec(
                num_scalar_prefetch=0,
                grid=(Mp // tm,),
                in_specs=[
                    pl.BlockSpec((tm, Kp), lambda i: (i, 0)),   # x row-tile
                    pl.BlockSpec((Kp, Np), lambda i: (0, 0)),   # whole weight (resident)
                    pl.BlockSpec((1, Np), lambda i: (0, 0)),    # whole bias (resident)
                ],
                out_specs=pl.BlockSpec((tm, Np), lambda i: (i, 0)),
            ),
            compiler_params=pltpu.CompilerParams(
                dimension_semantics=("parallel",),
                vmem_limit_bytes=vmem_limit,
            ),
            cost_estimate=pl.CostEstimate(
                flops=2 * Mp * Np * Kp,
                transcendentals=(Mp * Np if activation == "sigmoid" else 0),
                bytes_accessed=(Mp * Kp * itemsize + weight_bytes
                                + Np * 4 + Mp * Np * out_itemsize),
            ),
        )(x2d, wt, bias2d)
    else:
        # -------- General path: (M, N, K) grid, K innermost reduction axis. --------
        grid = (Mp // tm, Np // tn, Kp // tk)
        kernel = functools.partial(_dense_tiled_kernel, activation=activation)
        out_p = pl.pallas_call(
            kernel,
            out_shape=jax.ShapeDtypeStruct((Mp, Np), out_dtype),
            grid_spec=pltpu.PrefetchScalarGridSpec(
                num_scalar_prefetch=0,
                grid=grid,
                in_specs=[
                    pl.BlockSpec((tm, tk), lambda i, j, k: (i, k)),  # x tile
                    pl.BlockSpec((tk, tn), lambda i, j, k: (k, j)),  # weight tile (K, N layout)
                    pl.BlockSpec((1, tn), lambda i, j, k: (0, j)),   # bias column tile
                ],
                out_specs=pl.BlockSpec((tm, tn), lambda i, j, k: (i, j)),
                scratch_shapes=[pltpu.VMEM((tm, tn), jnp.float32)],
            ),
            compiler_params=pltpu.CompilerParams(
                dimension_semantics=("parallel", "parallel", "arbitrary"),
                vmem_limit_bytes=vmem_limit,
            ),
            cost_estimate=pl.CostEstimate(
                flops=2 * Mp * Np * Kp,
                transcendentals=(Mp * Np if activation == "sigmoid" else 0),
                bytes_accessed=(
                    (Np // tn) * Mp * Kp * itemsize        # x re-read per output-column tile
                    + (Mp // tm) * Kp * Np * itemsize      # W re-read per output-row tile
                    + Np * 4
                    + Mp * Np * out_itemsize
                ),
            ),
        )(x2d, wt, bias2d)

    if Mp != M or Np != out_size:
        out2d = out_p[:M, :out_size]
    else:
        out2d = out_p
    return out2d.reshape(*lead, out_size)


def dense_apply(x, weight, bias, activation="relu", compute_dtype=None):
    """Convenience wrapper: prep params (normally done once) + forward."""
    wt, b2d = prepare_dense_params(weight, bias, compute_dtype=compute_dtype)
    return dense_forward(x, wt, b2d, out_size=weight.shape[0], activation=activation)


if __name__ == "__main__":
    # Small deterministic example consistent with Dense(input_size=32, out_size=64).
    batch, seq, hidden, out_size = 2, 8, 32, 64

    key = jax.random.PRNGKey(0)
    kx, kw, kb = jax.random.split(key, 3)

    x = jax.random.normal(kx, (batch, seq, hidden), dtype=jnp.float32)
    # Deterministic synthetic "init" of nn.Linear params (not a checkpoint load).
    weight = jax.random.normal(kw, (out_size, hidden), dtype=jnp.float32) * 0.05
    bias = jax.random.normal(kb, (out_size,), dtype=jnp.float32) * 0.05

    # One-time parameter prep (transpose + pad), then forward.
    wt, b2d = prepare_dense_params(weight, bias)

    # ReLU variant (module default)
    y = dense_forward(x, wt, b2d, out_size=out_size, activation="relu")
    y = jax.block_until_ready(y)
    y_ref = jnp.maximum(x @ weight.T + bias, 0.0)
    assert y.shape == (batch, seq, out_size)
    assert jnp.allclose(y, y_ref, atol=1e-5, rtol=1e-5)

    # Sigmoid variant
    ys = dense_forward(x, wt, b2d, out_size=out_size, activation="sigmoid")
    ys = jax.block_until_ready(ys)
    ys_ref = jax.nn.sigmoid(x @ weight.T + bias)
    assert jnp.allclose(ys, ys_ref, atol=1e-5, rtol=1e-5)

    # TODO(synk): nn.Dropout is defined in __init__ but never used in forward -> intentionally not implemented.
    print("KERNEL_OK")
</pallas_src>

<mosaic_0001>
module attributes {stable_mosaic.version = 11 : i64} {
  func.func @_dense_small_kernel(%arg0: i32, %arg1: memref<16x128xf32, #tpu.memory_space<vmem>>, %arg2: memref<128x128xf32, #tpu.memory_space<vmem>>, %arg3: memref<1x128xf32, #tpu.memory_space<vmem>>, %arg4: memref<16x128xf32, #tpu.memory_space<vmem>>) attributes {dimension_semantics = [#tpu.dimension_semantics<parallel>], iteration_bounds = array<i64: 1>, scalar_prefetch = 0 : i64, scratch_operands = 0 : i64, tpu.core_type = #tpu.core_type<tc>, window_params = [{transform_indices = @transform_0, window_bounds = array<i64: 16, 128>}, {pipeline_mode = #tpu.pipeline_mode<synchronous>, transform_indices = @transform_1, window_bounds = array<i64: 128, 128>}, {pipeline_mode = #tpu.pipeline_mode<synchronous>, transform_indices = @transform_2, window_bounds = array<i64: 1, 128>}, {transform_indices = @transform_3, window_bounds = array<i64: 16, 128>}]} {
    %c0 = arith.constant 0 : index
    %c0_0 = arith.constant 0 : index
    %0 = vector.load %arg1[%c0, %c0_0] : memref<16x128xf32, #tpu.memory_space<vmem>>, vector<16x128xf32>
    %c0_1 = arith.constant 0 : index
    %c0_2 = arith.constant 0 : index
    %1 = vector.load %arg2[%c0_1, %c0_2] : memref<128x128xf32, #tpu.memory_space<vmem>>, vector<128x128xf32>
    %cst = arith.constant dense<0.000000e+00> : vector<16x128xf32>
    %2 = tpu.matmul %0, %1, %cst {dimension_numbers = #tpu.dot_dimension_numbers<[1], [0], [0], [1], [0, 0, 1, 1], [], []>} : vector<16x128xf32>, vector<128x128xf32>, vector<16x128xf32> -> vector<16x128xf32>
    %c0_3 = arith.constant 0 : index
    %c0_4 = arith.constant 0 : index
    %3 = vector.load %arg3[%c0_3, %c0_4] : memref<1x128xf32, #tpu.memory_space<vmem>>, vector<1x128xf32>
    %4 = vector.broadcast %3 : vector<1x128xf32> to vector<16x128xf32>
    %5 = arith.addf %2, %4 : vector<16x128xf32>
    %cst_5 = arith.constant 0.000000e+00 : f32
    %6 = vector.broadcast %cst_5 : f32 to vector<16x128xf32>
    %7 = arith.maximumf %5, %6 : vector<16x128xf32>
    %c0_6 = arith.constant 0 : index
    %c0_7 = arith.constant 0 : index
    %8 = vector.load %arg4[%c0_6, %c0_7] : memref<16x128xf32, #tpu.memory_space<vmem>>, vector<16x128xf32>
    tpu.vector_store %arg4[%c0_6, %c0_7], %7 {strides = array<i32>} : memref<16x128xf32, #tpu.memory_space<vmem>>, vector<16x128xf32>,
    return
  }
  func.func @transform_0(%arg0: i32) -> (i32, i32) {
    %c0_i32 = arith.constant 0 : i32
    %c0_i32_0 = arith.constant 0 : i32
    return %arg0, %c0_i32 : i32, i32
  }
  func.func @transform_1(%arg0: i32) -> (i32, i32) {
    %c0_i32 = arith.constant 0 : i32
    %c0_i32_0 = arith.constant 0 : i32
    %c0_i32_1 = arith.constant 0 : i32
    return %c0_i32, %c0_i32_0 : i32, i32
  }
  func.func @transform_2(%arg0: i32) -> (i32, i32) {
    %c0_i32 = arith.constant 0 : i32
    %c0_i32_0 = arith.constant 0 : i32
    %c0_i32_1 = arith.constant 0 : i32
    return %c0_i32, %c0_i32_0 : i32, i32
  }
  func.func @transform_3(%arg0: i32) -> (i32, i32) {
    %c0_i32 = arith.constant 0 : i32
    %c0_i32_0 = arith.constant 0 : i32
    return %arg0, %c0_i32 : i32, i32
  }
}

</mosaic_0001>

<bundles_post_ra>
// kernel: dense_forward.1
= control target key start
LH: loop header
LB: loop body
LE: loop exit
PB: predicated region body
PF: predicated region fallthrough
CT: control target
= control target key end

     0   :  { %8 = vsyncpa [#allocation3], 0  ;;  %s216_s12 = smov [#allocation2]   ;;  %s257_s0 = inlined_call_operand.vmem [shape: f32[16,128], index: 0, kind: input, shape index: {}]   ;;  %s258_s1 = inlined_call_operand.hbm [shape: f32[128,128], index: 1, kind: input, shape index: {}]   ;;  %s259_s2 = inlined_call_operand.vmem [shape: f32[1,128], index: 2, kind: input, shape index: {}]   ;;  %s260_s3 = inlined_call_operand.vmem [shape: f32[16,128], index: 3, kind: output, shape index: {}]  }
   0x1   :  { %s16_s13 = sshll.u32 %s216_s12, 4  ;;  %s17_s13 = int_to_ptr.vmem [resolvable:$true] %s16_s13 }
   0x2   :  { %s202_s14 = scalar_lea.vmem %s17_s13, 2048  ;;  %p207_p1 = scmp.lt.s32.totalorder %s17_s13, %s17_s13 }
   0x3   :  { %p203_p0 = scmp.ne.s32.totalorder %s17_s13, %s202_s14  ;;  %p208_p2 = scmp.lt.s32.totalorder %s202_s14, %s202_s14 }
   0x5   :  { %p209_p3 = por %p208_p2, %p207_p1 }
   0x7   :  { %p210_p4 = pnand %p209_p3, %p203_p0 }
   0x9   :  { %213 = shalt.err (!%p210_p4)
}
   0xa   :  { %s217_s15 = smov 128   ;;  %s218_s16 = smov 8  }
   0xb   :  { %22 = dma.hbm_to_vmem [thread:$0]  %s258_s1, 2048, %s17_s13, [#allocation3], %s217_s15, %s217_s15, %s218_s16  }
   0xc   :  { %214 = dma.done.wait [#allocation3], 2048  }
   0xd   :  { %215 = vsyncadd [#allocation3], 4294965248  ;;  %v45_v0 = vld [vmem:[#allocation2 + $0x78] sm:$0xff]  ;;  %v44_v1 = vld [vmem:[#allocation2 + $0x70] sm:$0xff] }
   0xe   :  { %156 = vmatprep.subr.mxu0 %v45_v0  ;;  %v43_v2 = vld [vmem:[#allocation2 + $0x68] sm:$0xff]  ;;  %v42_v3 = vld [vmem:[#allocation2 + $0x60] sm:$0xff]  ;;  %v41_v5 = vld [vmem:[#allocation2 + $0x58] sm:$0xff] }
   0xf   :  { %157 = vmatpush3.msra.mxu0 %v45_v0  ;;  %v28_v4 = vld [vmem:[%s257_s0] sm:$0xff]  ;;  %v40_v6 = vld [vmem:[#allocation2 + $0x50] sm:$0xff]  ;;  %v39_v7 = vld [vmem:[#allocation2 + $0x48] sm:$0xff] }
  0x10   :  { %158 = vmatprep.subr.mxu0 %v44_v1  ;;  %188 = vmatprep.mubr.f32.mxu0 %v28_v4  ;;  %v38_v8 = vld [vmem:[#allocation2 + $0x40] sm:$0xff]  ;;  %v37_v9 = vld [vmem:[#allocation2 + $0x38] sm:$0xff]  ;;  %v36_v10 = vld [vmem:[#allocation2 + $0x30] sm:$0xff] }
  0x11   :  { %159 = vmatpush3.msra.mxu0 %v44_v1  ;;  %v35_v11 = vld [vmem:[#allocation2 + $0x28] sm:$0xff]  ;;  %v34_v12 = vld [vmem:[#allocation2 + $0x20] sm:$0xff]  ;;  %v33_v13 = vld [vmem:[#allocation2 + $0x18] sm:$0xff] }
  0x12   :  { %160 = vmatprep.subr.mxu0 %v43_v2  ;;  %v32_v14 = vld [vmem:[#allocation2 + $0x10] sm:$0xff]  ;;  %v31_v15 = vld [vmem:[#allocation2 + $0x8] sm:$0xff]  ;;  %v30_v16 = vld [vmem:[#allocation2] sm:$0xff] }
  0x13   :  { %161 = vmatpush3.msra.mxu0 %v43_v2  ;;  %v29_v17 = vld [vmem:[%s257_s0 + $0x8] sm:$0xff]  ;;  %v137_v18 = vld [vmem:[%s259_s2] ss:$0 sm:$0xff] }
  0x14   :  { %162 = vmatprep.subr.mxu0 %v42_v3 }
  0x15   :  { %163 = vmatpush3.msra.mxu0 %v42_v3 }
  0x16   :  { %164 = vmatprep.subr.mxu0 %v41_v5 }
  0x17   :  { %165 = vmatpush3.msra.mxu0 %v41_v5 }
  0x18   :  { %166 = vmatprep.subr.mxu0 %v40_v6 }
  0x19   :  { %167 = vmatpush3.msra.mxu0 %v40_v6 }
  0x1a   :  { %168 = vmatprep.subr.mxu0 %v39_v7 }
  0x1b   :  { %169 = vmatpush3.msra.mxu0 %v39_v7 }
  0x1c   :  { %170 = vmatprep.subr.mxu0 %v38_v8 }
  0x1d   :  { %171 = vmatpush3.msra.mxu0 %v38_v8 }
  0x1e   :  { %172 = vmatprep.subr.mxu0 %v37_v9 }
  0x1f   :  { %173 = vmatpush3.msra.mxu0 %v37_v9 }
  0x20   :  { %174 = vmatprep.subr.mxu0 %v36_v10 }
  0x21   :  { %175 = vmatpush3.msra.mxu0 %v36_v10 }
  0x22   :  { %176 = vmatprep.subr.mxu0 %v35_v11 }
  0x23   :  { %177 = vmatpush3.msra.mxu0 %v35_v11 }
  0x24   :  { %178 = vmatprep.subr.mxu0 %v34_v12 }
  0x25   :  { %179 = vmatpush3.msra.mxu0 %v34_v12 }
  0x26   :  { %180 = vmatprep.subr.mxu0 %v33_v13 }
  0x27   :  { %181 = vmatpush3.msra.mxu0 %v33_v13 }
  0x28   :  { %182 = vmatprep.subr.mxu0 %v32_v14 }
  0x29   :  { %183 = vmatpush3.msra.mxu0 %v32_v14 }
  0x2a   :  { %184 = vmatprep.subr.mxu0 %v31_v15 }
  0x2b   :  { %185 = vmatpush3.msra.mxu0 %v31_v15 }
  0x2c   :  { %186 = vmatprep.subr.mxu0 %v30_v16 }
  0x2d   :  { %187 = vmatpush3.msra.mxu0 %v30_v16 }
  0x2e   :  { %189 = vmatmul.mubr.f32.vlgmr.msra.gmra.mxu0 %v29_v17 }
  0xee   :  { %v190_v19 = vpop.f32.mrf.mxu0 }
  0xef   :  { %v125_v20 = vadd.f32 %v190_v19, %v137_v18 }
  0xf0   :  { %v119_v21 = vpop.f32.mrf.mxu0 }
  0xf1   :  { %v129_v22 = vmax.f32 %v125_v20, 0.0  ;;  %v120_v23 = vadd.f32 %v137_v18, %v119_v21 }
  0xf3   :  { %131 = vst [vmem:[%s260_s3 + $0x8] sm:$0xff] %v129_v22  ;;  %v128_v24 = vmax.f32 %v120_v23, 0.0 }
  0xf5   :  { %130 = vst [vmem:[%s260_s3] sm:$0xff] %v128_v24 }
  0xf6   :  { %136 = vsyncpa [#allocation3], 1 }

</bundles_post_ra>
